<compile_context>
chip_gen: v7x
topology: tpu7x:2x2x1
jax: 0.10.0
libtpu: 0.0.40
codegen_flags: <defaults>
</compile_context>

<pallas_src>
import functools

import jax
import jax.numpy as jnp
from jax import lax
from jax.experimental import pallas as pl
from jax.experimental.pallas import tpu as pltpu


def _hdce_kernel(*refs, inv_T, has_weight):
    if has_weight:
        q_ref, k_ref, w_ref, lpos_ref, ce_ref, m_sc, l_sc = refs
    else:
        q_ref, k_ref, lpos_ref, ce_ref, m_sc, l_sc = refs
        w_ref = None

    qi = pl.program_id(1)          # query-row block ("parallel")
    j = pl.program_id(2)           # key-patch tile (reduction, "arbitrary")
    nj = pl.num_programs(2)
    inv_T = jnp.float32(inv_T)

    @pl.when(j == 0)
    def _init():
        m_sc[...] = jnp.full_like(m_sc, -jnp.inf)
        l_sc[...] = jnp.zeros_like(l_sc)

    q = q_ref[...]                  # (bt, tq, D)
    kt = k_ref[...]                 # (bt, tk, D)
    _, tq, _ = q.shape
    _, tk, _ = kt.shape

    # Scores for this (row block, key tile) on the MXU with f32 accumulation.
    s = jnp.einsum('bpd,bkd->bpk', q, kt,
                   preferred_element_type=jnp.float32)          # (bt, tq, tk)
    if has_weight:
        s = s * w_ref[...].astype(jnp.float32)                  # bf16 stream -> f32

    # Positive-pair (diagonal) mask: global row qi*tq + p == global col j*tk + c.
    # Thin iotas + broadcast compare (no full-tile int32 iota temporaries).
    rows = lax.broadcasted_iota(jnp.int32, (tq, 1), 0)
    cols = lax.broadcasted_iota(jnp.int32, (1, tk), 1)
    diag = rows == (cols + (j * tk - qi * tq))                   # (tq, tk)
    x = jnp.where(diag, jnp.float32(-10.0), s) * inv_T           # l_neg / T

    # Online logsumexp over the negatives (lane) axis.
    m_prev = m_sc[...]
    m_new = jnp.maximum(m_prev, jnp.max(x, axis=-1, keepdims=True))
    l_sc[...] = (l_sc[...] * jnp.exp(m_prev - m_new)
                 + jnp.sum(jnp.exp(x - m_new), axis=-1, keepdims=True))
    m_sc[...] = m_new

    @pl.when(j == nj - 1)
    def _finalize():
        # v = logsumexp((l_neg - l_pos)/T);  CE(target 0) = softplus(v).
        lse = m_sc[...] + jnp.log(l_sc[...])                             # (bt,tq,1)
        v = jnp.transpose(lse, (0, 2, 1)) - lpos_ref[...] * inv_T        # (bt,1,tq)
        # Stable softplus.  log(1 + exp(-|v|)) is numerically equivalent to
        # log1p here: whenever exp(-|v|) < eps the correction is < eps * |v|.
        ce_ref[...] = jnp.maximum(v, 0.0) + jnp.log(1.0 + jnp.exp(-jnp.abs(v)))


def _round_up(x, m):
    return (x + m - 1) // m * m


def _vmem_capacity_bytes():
    """Per-core VMEM capacity (generation-aware, with safe fallbacks)."""
    by_kind = 64 * 1024 * 1024                      # conservative default (v7x)
    try:
        kind = str(jax.devices()[0].device_kind).lower()
        if "v7" not in kind and any(v in kind for v in ("v4", "v5", "v6")):
            by_kind = 128 * 1024 * 1024
    except Exception:
        pass
    try:
        cap = int(getattr(pltpu.get_tpu_info(), "vmem_capacity_bytes", 0))
        if cap > 0:
            return min(cap, by_kind)
    except Exception:
        pass
    return by_kind


def _num_tensorcores():
    """TensorCores sharing this kernel's grid (megacore sharding)."""
    try:
        dev = jax.devices()[0]
        nc = getattr(dev, "num_cores", None)
        if isinstance(nc, int) and nc > 0:
            return nc
        if "v7" in str(getattr(dev, "device_kind", "")).lower():
            return 2
    except Exception:
        pass
    return 1


def _tile_candidates(P):
    """Valid block sizes along a P-sized dim: P itself, or multiples of 128
    dividing P.  256-multiples are preferred for the 256-wide v6e/v7x MXU."""
    c256 = sorted((t for t in range(256, P, 256) if P % t == 0), reverse=True)
    c128 = sorted((t for t in range(128, P, 128) if P % t == 0 and t % 256 != 0),
                  reverse=True)
    return [P] + c256 + c128


def _select_tiling(bs, P, D, has_weight, in_itemsize, w_itemsize,
                   vmem_budget, num_cores):
    """Pick (bt, tq, tk) keeping the estimated VMEM footprint under
    `vmem_budget` while keeping every TensorCore of the chip busy."""

    def footprint(bt, tq, tk):
        b_q = 2 * bt * tq * D * in_itemsize                     # double-buffered
        b_k = 2 * bt * tk * D * in_itemsize
        b_w = 2 * bt * tq * tk * w_itemsize if has_weight else 0
        b_aux = 4 * bt * _round_up(tq, 128) * 4                 # l_pos + out
        b_scores = 4 * bt * tq * tk * 4                         # s/x/exp/mask live
        b_stats = 2 * bt * _round_up(tq, 8) * 128 * 4           # lane-padded m, l
        return b_q + b_k + b_w + b_aux + b_scores + b_stats

    cands = _tile_candidates(P)

    # Need >= num_cores parallel grid steps; split the query rows when the
    # batch axis alone cannot provide them (bs == 1 on a 2-TC v7x chip).
    tq_cands = cands
    if num_cores > 1 and bs < num_cores:
        split = [t for t in cands if bs * (P // t) >= num_cores]
        if split:
            tq_cands = split

    chosen = None
    for tq_c in tq_cands:
        for tk_c in cands:
            if footprint(1, tq_c, tk_c) <= vmem_budget:
                chosen = (tq_c, tk_c)
                break
        if chosen is not None:
            break
    if chosen is None:
        raise ValueError(
            f"PatchHDCELoss kernel: no (tq, tk) tiling of P={P}, D={D} fits the "
            f"VMEM budget of {vmem_budget} bytes (P needs a divisor that is a "
            f"multiple of 128).")
    tq, tk = chosen

    # Grow bt to amortize per-step overhead.  On 1-TC chips take the largest
    # fitting divisor of bs; on multi-TC chips keep the parallel extent a
    # multiple of the core count when possible.
    def pick_bt(require_balanced):
        for cand in sorted((d for d in range(1, bs + 1) if bs % d == 0),
                           reverse=True):
            par = (bs // cand) * (P // tq)
            if require_balanced and par % num_cores != 0:
                continue
            if footprint(cand, tq, tk) <= vmem_budget:
                return cand
        return None

    bt = pick_bt(num_cores > 1) or pick_bt(False) or 1
    return bt, tq, tk


def patch_hdce_loss(feat_q, feat_k, weight=None, *, batch_size, nce_T,
                    nce_includes_all_negatives_from_minibatch=False,
                    matmul_dtype=jnp.float32, tq_override=None, tk_override=None):
    """Forward of PatchHDCELoss.  Returns a vector of shape (N,) like PyTorch
    (loss_vec = exp(v - v.detach()) == 1 elementwise in the forward, so
    loss_vec.mean() - 1 == 0 and the result equals CELoss_dummy.detach()).

    matmul_dtype=jnp.bfloat16 opts into the native bf16 MXU path (halves the
    q/k/weight HBM streams); the f32 default keeps PyTorch's numerics.
    """
    N, dim = feat_q.shape
    bs = 1 if nce_includes_all_negatives_from_minibatch else batch_size
    if N % bs != 0:
        raise ValueError(f"batchSize {N} not divisible by batch_dim_for_bmm {bs}")
    P = N // bs

    q = feat_q.reshape(bs, P, dim).astype(matmul_dtype)
    k = lax.stop_gradient(feat_k).reshape(bs, P, dim).astype(matmul_dtype)
    has_weight = weight is not None

    # l_pos = rowwise <q, k>, computed once outside the kernel and streamed as
    # a tiny lane-dense (bs, 1, P) input (removes the per-step scratch stores).
    l_pos = jnp.sum(q.astype(jnp.float32) * k.astype(jnp.float32),
                    axis=-1).reshape(bs, 1, P)

    in_itemsize = jnp.dtype(matmul_dtype).itemsize
    vmem_cap = _vmem_capacity_bytes()
    num_cores = _num_tensorcores()
    bt, tq, tk = _select_tiling(bs, P, dim, has_weight, in_itemsize, in_itemsize,
                                vmem_budget=int(0.6 * vmem_cap),
                                num_cores=num_cores)
    if tq_override is not None:
        tq = int(tq_override)
        assert P % tq == 0 and (tq == P or tq % 128 == 0), "invalid tq_override"
    if tk_override is not None:
        tk = int(tk_override)
        assert P % tk == 0 and (tk == P or tk % 128 == 0), "invalid tk_override"

    kernel = functools.partial(_hdce_kernel, inv_T=float(1.0 / nce_T),
                               has_weight=has_weight)

    in_specs = [
        pl.BlockSpec((bt, tq, dim), lambda b, qi, j: (b, qi, 0)),   # q row block
        pl.BlockSpec((bt, tk, dim), lambda b, qi, j: (b, j, 0)),    # key tile
    ]
    inputs = [q, k]
    if has_weight:
        in_specs.append(pl.BlockSpec((bt, tq, tk), lambda b, qi, j: (b, qi, j)))
        inputs.append(weight.reshape(bs, P, P).astype(matmul_dtype))
    in_specs.append(pl.BlockSpec((bt, 1, tq), lambda b, qi, j: (b, 0, qi)))
    inputs.append(l_pos)

    bytes_accessed = (bs * P * dim * in_itemsize                     # q
                      + (P // tq) * bs * P * dim * in_itemsize       # k (re-streamed)
                      + (bs * P * P * in_itemsize if has_weight else 0)
                      + bs * P * 4                                   # l_pos
                      + bs * P * 4)                                  # out
    cost = pl.CostEstimate(flops=2 * bs * P * P * dim,
                           transcendentals=bs * P * P,
                           bytes_accessed=int(bytes_accessed))

    def _run(*arrays):
        return pl.pallas_call(
            kernel,
            out_shape=jax.ShapeDtypeStruct((bs, 1, P), jnp.float32),
            grid_spec=pltpu.PrefetchScalarGridSpec(
                num_scalar_prefetch=0,
                grid=(bs // bt, P // tq, P // tk),
                in_specs=in_specs,
                out_specs=pl.BlockSpec((bt, 1, tq), lambda b, qi, j: (b, 0, qi)),
                scratch_shapes=[pltpu.VMEM((bt, tq, 1), jnp.float32),   # running max
                                pltpu.VMEM((bt, tq, 1), jnp.float32)],  # running sum
            ),
            compiler_params=pltpu.CompilerParams(
                dimension_semantics=("parallel", "parallel", "arbitrary"),
                vmem_limit_bytes=int(0.85 * vmem_cap)),
            cost_estimate=cost,
        )(*arrays)

    # Forward-only kernel: differentiating fails loudly instead of silently
    # producing zero gradients.
    # TODO(synk): backward (grad of mean(v) through q) is not implemented.
    run = jax.custom_vjp(_run)

    def _fwd(*arrays):
        return _run(*arrays), None

    def _bwd(_, g):
        raise NotImplementedError(
            "PatchHDCELoss Pallas kernel implements the forward pass only.")

    run.defvjp(_fwd, _bwd)

    ce = run(*inputs)
    return ce.reshape(-1)        # (N,) == CELoss_dummy.detach()


def _reference(feat_q, feat_k, weight, batch_size, nce_T,
               includes_all=False, matmul_dtype=jnp.float32):
    """Pure-JAX mirror of the PyTorch forward.  `matmul_dtype` controls the
    precision the similarity matmuls / weight stream are fed with."""
    N, dim = feat_q.shape
    q = feat_q.astype(matmul_dtype)
    k = feat_k.astype(matmul_dtype)
    l_pos = jnp.sum(q.astype(jnp.float32) * k.astype(jnp.float32),
                    axis=1, keepdims=True)                               # (N,1)
    bs = 1 if includes_all else batch_size
    P = N // bs
    qb = q.reshape(bs, P, dim)
    kb = k.reshape(bs, P, dim)
    l_neg = jnp.einsum('bpd,bqd->bpq', qb, kb,
                       preferred_element_type=jnp.float32)
    if weight is not None:
        w = weight.reshape(bs, P, P).astype(matmul_dtype).astype(jnp.float32)
        l_neg = l_neg * w
    eye = jnp.eye(P, dtype=bool)[None]
    l_neg = jnp.where(eye, -10.0, l_neg).reshape(-1, P)                  # (N,P)
    logits = (l_neg - l_pos) / nce_T
    v = jax.scipy.special.logsumexp(logits, axis=1)
    loss_vec = jnp.exp(v - v)                                            # == 1
    out_dummy = jnp.concatenate([l_pos, l_neg], axis=1) / nce_T
    ce = jax.scipy.special.logsumexp(out_dummy, axis=1) - out_dummy[:, 0]
    return jnp.mean(loss_vec) - 1.0 + ce


if __name__ == "__main__":
    key = jax.random.PRNGKey(0)
    k1, k2, k3, k4, k5, k6 = jax.random.split(key, 6)

    nce_T = 0.07

    # Case 1: weighted, f32 (default) -> strict match vs PyTorch-equivalent ref.
    batch_size, npatches, dim = 2, 8, 32
    N = batch_size * npatches
    feat_q = jax.random.normal(k1, (N, dim), dtype=jnp.float32)
    feat_k = jax.random.normal(k2, (N, dim), dtype=jnp.float32)
    weight = jax.nn.softplus(
        jax.random.normal(k3, (batch_size, npatches, npatches), dtype=jnp.float32))

    out1 = jax.block_until_ready(
        patch_hdce_loss(feat_q, feat_k, weight, batch_size=batch_size, nce_T=nce_T))
    ref1 = _reference(feat_q, feat_k, weight, batch_size, nce_T)
    assert out1.shape == (N,)
    assert jnp.allclose(out1, ref1, rtol=1e-4, atol=1e-4), (out1, ref1)

    # Case 2: opt-in bf16 MXU path, validated against a bf16-aware reference.
    out2 = jax.block_until_ready(
        patch_hdce_loss(feat_q, feat_k, weight, batch_size=batch_size, nce_T=nce_T,
                        matmul_dtype=jnp.bfloat16))
    ref2 = _reference(feat_q, feat_k, weight, batch_size, nce_T,
                      matmul_dtype=jnp.bfloat16)
    assert jnp.allclose(out2, ref2, rtol=1e-3, atol=1e-3), (out2, ref2)

    # Case 3: no weight, all-negatives mode, forced row+key tiling -> exercises
    # the online-logsumexp reduction and the query-row "parallel" grid axis.
    P3, dim3 = 256, 32
    q3 = jax.random.normal(k4, (P3, dim3), dtype=jnp.float32)
    c3 = jax.random.normal(k5, (P3, dim3), dtype=jnp.float32)
    out3 = jax.block_until_ready(
        patch_hdce_loss(q3, c3, None, batch_size=4, nce_T=nce_T,
                        nce_includes_all_negatives_from_minibatch=True,
                        tq_override=128, tk_override=128))
    ref3 = _reference(q3, c3, None, 4, nce_T, includes_all=True)
    assert out3.shape == (P3,)
    assert jnp.allclose(out3, ref3, rtol=1e-4, atol=1e-4), (out3, ref3)

    # Case 4: weighted + row/key tiling + multi-batch grid (weighted tiled path).
    bs4, P4, dim4 = 2, 256, 32
    N4 = bs4 * P4
    q4 = jax.random.normal(k6, (N4, dim4), dtype=jnp.float32)
    c4 = jax.random.normal(k1, (N4, dim4), dtype=jnp.float32)
    w4 = jax.nn.softplus(jax.random.normal(k2, (bs4, P4, P4), dtype=jnp.float32))
    out4 = jax.block_until_ready(
        patch_hdce_loss(q4, c4, w4, batch_size=bs4, nce_T=nce_T,
                        tq_override=128, tk_override=128))
    ref4 = _reference(q4, c4, w4, bs4, nce_T)
    assert out4.shape == (N4,)
    assert jnp.allclose(out4, ref4, rtol=2e-4, atol=2e-4), (out4, ref4)

    print("KERNEL_OK")
</pallas_src>

<mosaic_0001>
module attributes {stable_mosaic.version = 11 : i64} {
  func.func @_hdce_kernel(%arg0: i32, %arg1: i32, %arg2: i32, %arg3: memref<2x8x32xf32, #tpu.memory_space<vmem>>, %arg4: memref<2x8x32xf32, #tpu.memory_space<vmem>>, %arg5: memref<2x8x8xf32, #tpu.memory_space<vmem>>, %arg6: memref<2x1x8xf32, #tpu.memory_space<vmem>>, %arg7: memref<2x1x8xf32, #tpu.memory_space<vmem>>, %arg8: memref<2x8x1xf32, #tpu.memory_space<vmem>>, %arg9: memref<2x8x1xf32, #tpu.memory_space<vmem>>) attributes {dimension_semantics = [#tpu.dimension_semantics<parallel>, #tpu.dimension_semantics<parallel>, #tpu.dimension_semantics<arbitrary>], iteration_bounds = array<i64: 1, 1, 1>, scalar_prefetch = 0 : i64, scratch_operands = 2 : i64, tpu.core_type = #tpu.core_type<tc>, window_params = [{transform_indices = @transform_0, window_bounds = array<i64: 2, 8, 32>}, {transform_indices = @transform_1, window_bounds = array<i64: 2, 8, 32>}, {transform_indices = @transform_2, window_bounds = array<i64: 2, 8, 8>}, {transform_indices = @transform_3, window_bounds = array<i64: 2, 1, 8>}, {transform_indices = @transform_4, window_bounds = array<i64: 2, 1, 8>}]} {
    %c0_i32 = arith.constant 0 : i32
    %0 = arith.cmpi eq, %arg2, %c0_i32 : i32
    %1 = arith.extui %0 : i1 to i32
    %c0_i32_0 = arith.constant 0 : i32
    %2 = arith.cmpi ne, %1, %c0_i32_0 : i32
    scf.if %2 {
      %cst_29 = arith.constant 0xFF800000 : f32
      %43 = vector.broadcast %cst_29 : f32 to vector<2x8x1xf32>
      %c0_30 = arith.constant 0 : index
      %c0_31 = arith.constant 0 : index
      %c0_32 = arith.constant 0 : index
      %44 = vector.load %arg8[%c0_30, %c0_31, %c0_32] : memref<2x8x1xf32, #tpu.memory_space<vmem>>, vector<2x8x1xf32>
      tpu.vector_store %arg8[%c0_30, %c0_31, %c0_32], %43 {strides = array<i32>} : memref<2x8x1xf32, #tpu.memory_space<vmem>>, vector<2x8x1xf32>,
      %cst_33 = arith.constant 0.000000e+00 : f32
      %45 = vector.broadcast %cst_33 : f32 to vector<2x8x1xf32>
      %c0_34 = arith.constant 0 : index
      %c0_35 = arith.constant 0 : index
      %c0_36 = arith.constant 0 : index
      %46 = vector.load %arg9[%c0_34, %c0_35, %c0_36] : memref<2x8x1xf32, #tpu.memory_space<vmem>>, vector<2x8x1xf32>
      tpu.vector_store %arg9[%c0_34, %c0_35, %c0_36], %45 {strides = array<i32>} : memref<2x8x1xf32, #tpu.memory_space<vmem>>, vector<2x8x1xf32>,
    } else {
    }
    %c0 = arith.constant 0 : index
    %c0_1 = arith.constant 0 : index
    %c0_2 = arith.constant 0 : index
    %3 = vector.load %arg3[%c0, %c0_1, %c0_2] : memref<2x8x32xf32, #tpu.memory_space<vmem>>, vector<2x8x32xf32>
    %c0_3 = arith.constant 0 : index
    %c0_4 = arith.constant 0 : index
    %c0_5 = arith.constant 0 : index
    %4 = vector.load %arg4[%c0_3, %c0_4, %c0_5] : memref<2x8x32xf32, #tpu.memory_space<vmem>>, vector<2x8x32xf32>
    "tpu.trace_start"() <{level = 10 : i32, message = "bpd,bkd->bpk"}> : () -> ()
    %cst = arith.constant dense<0.000000e+00> : vector<2x8x8xf32>
    %5 = tpu.matmul %3, %4, %cst {dimension_numbers = #tpu.dot_dimension_numbers<[2], [2], [1], [1], [0, 0, 0, 1, 1, 1], [0], [0]>} : vector<2x8x32xf32>, vector<2x8x32xf32>, vector<2x8x8xf32> -> vector<2x8x8xf32>
    "tpu.trace_stop"() : () -> ()
    %c0_6 = arith.constant 0 : index
    %c0_7 = arith.constant 0 : index
    %c0_8 = arith.constant 0 : index
    %6 = vector.load %arg5[%c0_6, %c0_7, %c0_8] : memref<2x8x8xf32, #tpu.memory_space<vmem>>, vector<2x8x8xf32>
    %7 = arith.mulf %5, %6 : vector<2x8x8xf32>
    %8 = tpu.iota {dimensions = array<i32: 0>} : vector<8x1xi32>
    %9 = tpu.iota {dimensions = array<i32: 1>} : vector<1x8xi32>
    %c8_i32 = arith.constant 8 : i32
    %10 = arith.muli %arg2, %c8_i32 : i32
    %c8_i32_9 = arith.constant 8 : i32
    %11 = arith.muli %arg1, %c8_i32_9 : i32
    %12 = arith.subi %10, %11 : i32
    %13 = vector.broadcast %12 : i32 to vector<1x8xi32>
    %14 = arith.addi %9, %13 : vector<1x8xi32>
    %15 = vector.broadcast %8 : vector<8x1xi32> to vector<8x8xi32>
    %16 = vector.broadcast %14 : vector<1x8xi32> to vector<8x8xi32>
    %17 = arith.cmpi eq, %15, %16 : vector<8x8xi32>
    %cst_10 = arith.constant -1.000000e+01 : f32
    %18 = vector.shape_cast %17 : vector<8x8xi1> to vector<1x8x8xi1>
    %19 = vector.broadcast %18 : vector<1x8x8xi1> to vector<2x8x8xi1>
    %20 = vector.broadcast %cst_10 : f32 to vector<2x8x8xf32>
    %21 = arith.select %19, %20, %7 : vector<2x8x8xi1>, vector<2x8x8xf32>
    %cst_11 = arith.constant 14.2857141 : f32
    %22 = vector.broadcast %cst_11 : f32 to vector<2x8x8xf32>
    %23 = arith.mulf %21, %22 : vector<2x8x8xf32>
    %c0_12 = arith.constant 0 : index
    %c0_13 = arith.constant 0 : index
    %c0_14 = arith.constant 0 : index
    %24 = vector.load %arg8[%c0_12, %c0_13, %c0_14] : memref<2x8x1xf32, #tpu.memory_space<vmem>>, vector<2x8x1xf32>
    %cst_15 = arith.constant dense<0xFF800000> : vector<2x8xf32>
    %25 = vector.multi_reduction <maximumf>, %23, %cst_15 [2] : vector<2x8x8xf32> to vector<2x8xf32>
    %26 = vector.shape_cast %25 : vector<2x8xf32> to vector<2x8x1xf32>
    %27 = arith.maximumf %24, %26 : vector<2x8x1xf32>
    %c0_16 = arith.constant 0 : index
    %c0_17 = arith.constant 0 : index
    %c0_18 = arith.constant 0 : index
    %28 = vector.load %arg9[%c0_16, %c0_17, %c0_18] : memref<2x8x1xf32, #tpu.memory_space<vmem>>, vector<2x8x1xf32>
    %29 = arith.subf %24, %27 : vector<2x8x1xf32>
    %30 = math.exp %29 : vector<2x8x1xf32>
    %31 = arith.mulf %28, %30 : vector<2x8x1xf32>
    %32 = vector.broadcast %27 : vector<2x8x1xf32> to vector<2x8x8xf32>
    %33 = arith.subf %23, %32 : vector<2x8x8xf32>
    %34 = math.exp %33 : vector<2x8x8xf32>
    %cst_19 = arith.constant dense<0.000000e+00> : vector<2x8xf32>
    %35 = vector.multi_reduction <add>, %34, %cst_19 [2] : vector<2x8x8xf32> to vector<2x8xf32>
    %36 = vector.shape_cast %35 : vector<2x8xf32> to vector<2x8x1xf32>
    %37 = arith.addf %31, %36 : vector<2x8x1xf32>
    %c0_20 = arith.constant 0 : index
    %c0_21 = arith.constant 0 : index
    %c0_22 = arith.constant 0 : index
    %38 = vector.load %arg9[%c0_20, %c0_21, %c0_22] : memref<2x8x1xf32, #tpu.memory_space<vmem>>, vector<2x8x1xf32>
    tpu.vector_store %arg9[%c0_20, %c0_21, %c0_22], %37 {strides = array<i32>} : memref<2x8x1xf32, #tpu.memory_space<vmem>>, vector<2x8x1xf32>,
    %c0_23 = arith.constant 0 : index
    %c0_24 = arith.constant 0 : index
    %c0_25 = arith.constant 0 : index
    %39 = vector.load %arg8[%c0_23, %c0_24, %c0_25] : memref<2x8x1xf32, #tpu.memory_space<vmem>>, vector<2x8x1xf32>
    tpu.vector_store %arg8[%c0_23, %c0_24, %c0_25], %27 {strides = array<i32>} : memref<2x8x1xf32, #tpu.memory_space<vmem>>, vector<2x8x1xf32>,
    %c0_i32_26 = arith.constant 0 : i32
    %40 = arith.cmpi eq, %arg2, %c0_i32_26 : i32
    %41 = arith.extui %40 : i1 to i32
    %cst_27 = arith.constant 14.2857141 : f32
    %c0_i32_28 = arith.constant 0 : i32
    %42 = arith.cmpi ne, %41, %c0_i32_28 : i32
    scf.if %42 {
      %c0_29 = arith.constant 0 : index
      %c0_30 = arith.constant 0 : index
      %c0_31 = arith.constant 0 : index
      %43 = vector.load %arg8[%c0_29, %c0_30, %c0_31] : memref<2x8x1xf32, #tpu.memory_space<vmem>>, vector<2x8x1xf32>
      %c0_32 = arith.constant 0 : index
      %c0_33 = arith.constant 0 : index
      %c0_34 = arith.constant 0 : index
      %44 = vector.load %arg9[%c0_32, %c0_33, %c0_34] : memref<2x8x1xf32, #tpu.memory_space<vmem>>, vector<2x8x1xf32>
      %45 = math.log %44 : vector<2x8x1xf32>
      %46 = arith.addf %43, %45 : vector<2x8x1xf32>
      %47 = tpu.transpose %46, [0, 2, 1] : vector<2x8x1xf32> -> vector<2x1x8xf32>
      %c0_35 = arith.constant 0 : index
      %c0_36 = arith.constant 0 : index
      %c0_37 = arith.constant 0 : index
      %48 = vector.load %arg6[%c0_35, %c0_36, %c0_37] : memref<2x1x8xf32, #tpu.memory_space<vmem>>, vector<2x1x8xf32>
      %49 = vector.broadcast %cst_27 : f32 to vector<2x1x8xf32>
      %50 = arith.mulf %48, %49 : vector<2x1x8xf32>
      %51 = arith.subf %47, %50 : vector<2x1x8xf32>
      %cst_38 = arith.constant 0.000000e+00 : f32
      %52 = vector.broadcast %cst_38 : f32 to vector<2x1x8xf32>
      %53 = arith.maximumf %51, %52 : vector<2x1x8xf32>
      %54 = math.absf %51 : vector<2x1x8xf32>
      %cst_39 = arith.constant 0.000000e+00 : f32
      %55 = vector.broadcast %cst_39 : f32 to vector<2x1x8xf32>
      %56 = arith.subf %55, %54 : vector<2x1x8xf32>
      %57 = math.exp %56 : vector<2x1x8xf32>
      %cst_40 = arith.constant 1.000000e+00 : f32
      %58 = vector.broadcast %cst_40 : f32 to vector<2x1x8xf32>
      %59 = arith.addf %58, %57 : vector<2x1x8xf32>
      %60 = math.log %59 : vector<2x1x8xf32>
      %61 = arith.addf %53, %60 : vector<2x1x8xf32>
      %c0_41 = arith.constant 0 : index
      %c0_42 = arith.constant 0 : index
      %c0_43 = arith.constant 0 : index
      %62 = vector.load %arg7[%c0_41, %c0_42, %c0_43] : memref<2x1x8xf32, #tpu.memory_space<vmem>>, vector<2x1x8xf32>
      tpu.vector_store %arg7[%c0_41, %c0_42, %c0_43], %61 {strides = array<i32>} : memref<2x1x8xf32, #tpu.memory_space<vmem>>, vector<2x1x8xf32>,
    } else {
    }
    return
  }
  func.func @transform_0(%arg0: i32, %arg1: i32, %arg2: i32) -> (i32, i32, i32) {
    %c0_i32 = arith.constant 0 : i32
    %c0_i32_0 = arith.constant 0 : i32
    return %arg0, %arg1, %c0_i32 : i32, i32, i32
  }
  func.func @transform_1(%arg0: i32, %arg1: i32, %arg2: i32) -> (i32, i32, i32) {
    %c0_i32 = arith.constant 0 : i32
    %c0_i32_0 = arith.constant 0 : i32
    return %arg0, %arg2, %c0_i32 : i32, i32, i32
  }
  func.func @transform_2(%arg0: i32, %arg1: i32, %arg2: i32) -> (i32, i32, i32) {
    %c0_i32 = arith.constant 0 : i32
    return %arg0, %arg1, %arg2 : i32, i32, i32
  }
  func.func @transform_3(%arg0: i32, %arg1: i32, %arg2: i32) -> (i32, i32, i32) {
    %c0_i32 = arith.constant 0 : i32
    %c0_i32_0 = arith.constant 0 : i32
    return %arg0, %c0_i32, %arg1 : i32, i32, i32
  }
  func.func @transform_4(%arg0: i32, %arg1: i32, %arg2: i32) -> (i32, i32, i32) {
    %c0_i32 = arith.constant 0 : i32
    %c0_i32_0 = arith.constant 0 : i32
    return %arg0, %c0_i32, %arg1 : i32, i32, i32
  }
}

</mosaic_0001>

<bundles_post_ra>
// kernel: tpu_custom_call.1
= control target key start
LH: loop header
LB: loop body
LE: loop exit
PB: predicated region body
PF: predicated region fallthrough
CT: control target
= control target key end

     0   :  { %9 = vsyncpa [#allocation5], 0  ;;  %s682_s0 = inlined_call_operand.hbm [shape: f32[2,8,32], index: 0, kind: input, shape index: {}]   ;;  %s683_s1 = inlined_call_operand.hbm [shape: f32[2,8,32], index: 1, kind: input, shape index: {}]   ;;  %s684_s2 = inlined_call_operand.hbm [shape: f32[2,8,8], index: 2, kind: input, shape index: {}]   ;;  %s685_s3 = inlined_call_operand.vmem [shape: f32[2,1,8], index: 3, kind: input, shape index: {}]   ;;  %s686_s4 = inlined_call_operand.hbm [shape: f32[2,1,8], index: 4, kind: output, shape index: {}]  }
   0x1   :  { %10 = vsyncpa [#allocation8], 0 }
   0x2   :  { %11 = vsyncpa [#allocation6], 0  ;;  %s563_s15 = smov [#allocation7]   ;;  %s564_s17 = smov [#allocation4]  }
   0x3   :  { %s29_s16 = sshll.u32 %s563_s15, 4  ;;  %s17_s18 = sshll.u32 %s564_s17, 4  ;;  %s30_s16 = int_to_ptr.vmem [resolvable:$true] %s29_s16  ;;  %s600_s18 = int_to_ptr.vmem [resolvable:$true] %s17_s18 }
   0x4   :  { %s469_s21 = scalar_lea.hbm %s683_s1, 256 }
   0x5   :  { %p470_p0 = scmp.ne.s32.totalorder %s683_s1, %s469_s21  ;;  %p473_p1 = scmp.lt.u32.totalorder %s469_s21, %s683_s1 }
   0x7   :  { %p475_p2 = pnand %p473_p1, %p470_p0 }
   0x9   :  { %478 = shalt.err (!%p475_p2)
}
   0xa   :  { %s479_s26 = scalar_lea.vmem %s30_s16, 256  ;;  %p484_p4 = scmp.lt.s32.totalorder %s30_s16, %s30_s16 }
   0xb   :  { %p480_p3 = scmp.ne.s32.totalorder %s30_s16, %s479_s26  ;;  %p485_p5 = scmp.lt.s32.totalorder %s479_s26, %s479_s26 }
   0xd   :  { %p486_p6 = por %p485_p5, %p484_p4 }
   0xf   :  { %p487_p7 = pnand %p486_p6, %p480_p3 }
  0x11   :  { %490 = shalt.err (!%p487_p7)
}
  0x12   :  { %s565_s27 = smov 128   ;;  %s566_s28 = smov 8  }
  0x13   :  { %35 = dma.hbm_to_vmem [thread:$0]  %s683_s1, 256, %s30_s16, [#allocation8], %s565_s27, %s565_s27, %s566_s28  }
  0x14   :  { %s491_s7 = scalar_lea.hbm %s682_s0, 256 }
  0x15   :  { %p492_p8 = scmp.ne.s32.totalorder %s682_s0, %s491_s7  ;;  %p495_p9 = scmp.lt.u32.totalorder %s491_s7, %s682_s0 }
  0x17   :  { %p497_p10 = pnand %p495_p9, %p492_p8 }
  0x19   :  { %500 = shalt.err (!%p497_p10)
}
  0x1a   :  { %s501_s12 = scalar_lea.vmem %s600_s18, 256  ;;  %p506_p12 = scmp.lt.s32.totalorder %s600_s18, %s600_s18 }
  0x1b   :  { %p502_p11 = scmp.ne.s32.totalorder %s600_s18, %s501_s12  ;;  %p507_p13 = scmp.lt.s32.totalorder %s501_s12, %s501_s12 }
  0x1d   :  { %p508_p0 = por %p507_p13, %p506_p12 }
  0x1f   :  { %p509_p1 = pnand %p508_p0, %p502_p11 }
  0x21   :  { %512 = shalt.err (!%p509_p1)
}
  0x22   :  { %23 = dma.hbm_to_vmem [thread:$0]  %s682_s0, 256, %s600_s18, [#allocation5], %s565_s27, %s565_s27, %s566_s28  }
  0x23   :  { %s567_s14 = smov [#allocation9]   ;;  %s513_s19 = scalar_lea.hbm %s684_s2, 256 }
  0x24   :  { %s41_s15 = sshll.u32 %s567_s14, 4  ;;  %p514_p2 = scmp.ne.s32.totalorder %s684_s2, %s513_s19  ;;  %s42_s15 = int_to_ptr.vmem [resolvable:$true] %s41_s15 }
  0x25   :  { %p517_p3 = scmp.lt.u32.totalorder %s513_s19, %s684_s2 }
  0x27   :  { %p519_p4 = pnand %p517_p3, %p514_p2 }
  0x29   :  { %522 = shalt.err (!%p519_p4)
}
  0x2a   :  { %s523_s24 = scalar_lea.vmem %s42_s15, 256  ;;  %p528_p6 = scmp.lt.s32.totalorder %s42_s15, %s42_s15 }
  0x2b   :  { %p524_p5 = scmp.ne.s32.totalorder %s42_s15, %s523_s24  ;;  %p529_p7 = scmp.lt.s32.totalorder %s523_s24, %s523_s24 }
  0x2d   :  { %p530_p8 = por %p529_p7, %p528_p6 }
  0x2f   :  { %p531_p9 = pnand %p530_p8, %p524_p5 }
  0x31   :  { %534 = shalt.err (!%p531_p9)
}
  0x32   :  { %47 = dma.hbm_to_vmem [thread:$0]  %s684_s2, 256, %s42_s15, [#allocation8], %s565_s27, %s565_s27, %s566_s28  }
  0x33   :  { %557 = dma.done.wait [#allocation5], 256  }
  0x34   :  { %558 = vsyncadd [#allocation5], 4294967040 }
  0x35   :  { %559 = dma.done.wait [#allocation8], 512  }
  0x36   :  { %560 = vsyncadd [#allocation8], 4294966784  ;;  %v568_v0 = vmov 0.0   ;;  %vm569_vm0 = vmmov 0   ;;  %vm72_vm1 = vcmask 261120   ;;  %v70_v1 = vld [vmem:[#allocation7] sm:$0xff]  ;;  %v229_v6 = vlaneseq }
  0x37   :  { %425 = vmatprep.subr.mxu0 %v568_v0  ;;  %427 = vmatprep.mubr.msk.f32.mxu0 %vm569_vm0, %v568_v0  ;;  %v71_v2 = vld [vmem:[#allocation7 + $0x8] sm:$0xff]  ;;  %v68_v3 = vld [vmem:[#allocation4] sm:$0xff]  ;;  %v69_v4 = vld [vmem:[#allocation4 + $0x8] sm:$0xff]  ;;  %vm63_vm2 = vcmask 7168   ;;  %v570_v5 = vmov -inf   ;;  %vm247_vm4 = vcmask 64512  }
  0x38   :  { %430 = vmatprep.subr.mxu1 %v568_v0  ;;  %432 = vmatprep.mubr.msk.f32.mxu1 %vm569_vm0, %v568_v0  ;;  %64 = vst.msk [vmem:[#allocation2] sm:$0xff] %vm63_vm2, %v570_v5  ;;  %65 = vst.msk [vmem:[#allocation2 + $0x8] sm:$0xff] %vm63_vm2, %v570_v5  ;;  %v230_v7 = vshrl.u32 %v229_v6, 7  ;;  %v232_v8 = vand.u32 127, %v229_v6  ;;  %v225_v9 = vld [vmem:[#allocation9] sm:$0xff]  ;;  %v226_v10 = vld [vmem:[#allocation9 + $0x8] sm:$0xff] }
  0x39   :  { %426 = vmatpush3.xpose.msk.msra.mxu0 %vm72_vm1, %v70_v1  ;;  %431 = vmatpush3.xpose.msk.msra.mxu1 %vm72_vm1, %v71_v2  ;;  %66 = vst.msk [vmem:[#allocation3] sm:$0xff] %vm63_vm2, %v568_v0  ;;  %67 = vst.msk [vmem:[#allocation3 + $0x8] sm:$0xff] %vm63_vm2, %v568_v0  ;;  %v571_v23 = vmov 0   ;;  %v372_v0 = vld [vmem:[%s685_s3] sm:$0x1]  ;;  %vm396_vm5 = vcmask 57344  }
  0x3a   :  { %vm238_vm3 = vcmp.eq.s32.totalorder %v230_v7, %v232_v8  ;;  %447 = vset.pattern.permute.xlu1 %v571_v23  ;;  %v374_v1 = vmul.f32 14.285714, %v372_v0  ;;  %v373_v2 = vld [vmem:[%s685_s3 + $0x1] sm:$0x1]  ;;  %s572_s3 = smov [#allocation10]  }
  0x3b   :  { %v375_v5 = vmul.f32 14.285714, %v373_v2  ;;  %s404_s28 = sshll.u32 %s572_s3, 4  ;;  %s405_s28 = int_to_ptr.vmem [resolvable:$true] %s404_s28 }
  0x3c   :  { %428 = vmatmul.mubr.msk.f32.vlgmr.msra.gmra.mrb[0].mxu0 %vm72_vm1, %v68_v3  ;;  %433 = vmatmul.mubr.msk.f32.vlgmr.msra.gmra.mrb[0].mxu1 %vm72_vm1, %v69_v4  ;;  %s535_s29 = scalar_lea.vmem %s405_s28, 32  ;;  %p540_p11 = scmp.lt.s32.totalorder %s405_s28, %s405_s28 }
  0x3d   :  { %p536_p10 = scmp.ne.s32.totalorder %s405_s28, %s535_s29  ;;  %p541_p12 = scmp.lt.s32.totalorder %s535_s29, %s535_s29 }
  0x3f   :  { %v245_v24 = vld [vmem:[#allocation2] sm:$0xff]  ;;  %v246_v27 = vld [vmem:[#allocation2 + $0x8] sm:$0xff]  ;;  %p542_p13 = por %p541_p12, %p540_p11 }
  0x40   :  { %v256_v45 = vld [vmem:[#allocation3] sm:$0xff]  ;;  %v257_v49 = vld [vmem:[#allocation3 + $0x8] sm:$0xff] }
  0x41   :  { %p543_p0 = pnand %p542_p13, %p536_p10 }
 0x10f   :  { %v145_v11 = vpop.f32.mrb[0].mxu0  ;;  %v221_v12 = vpop.f32.mrb[0].mxu1 }
 0x110   :  { %v227_v13 = vmul.f32 %v225_v9, %v145_v11  ;;  %v429_v14 = vpop.f32.mrb[1].mxu0  ;;  %v228_v15 = vmul.f32 %v226_v10, %v221_v12  ;;  %v434_v16 = vpop.f32.mrb[1].mxu1 }
 0x112   :  { %v242_v17 = vsel %vm238_vm3, -10.0, %v228_v15  ;;  %v241_v18 = vsel %vm238_vm3, -10.0, %v227_v13 }
 0x113   :  { %v243_v19 = vmul.f32 14.285714, %v241_v18  ;;  %v244_v20 = vmul.f32 14.285714, %v242_v17 }
 0x115   :  { %v248_v21 = vsel %vm247_vm4, %v243_v19, -inf  ;;  %v251_v22 = vsel %vm247_vm4, %v244_v20, -inf }
 0x116   :  { %249 = vmax.xlane.f32.xlu0 %v248_v21 }
 0x11a   :  { %252 = vmax.xlane.f32.xlu0 %v251_v22 }
 0x1a3   :  { %v250_v25 = vpop.xlane.xlu0 %249 }
 0x1a4   :  { %v254_v26 = vmax.f32 %v245_v24, %v250_v25 }
 0x1a6   :  { %v258_v28 = vsub.f32 %v245_v24, %v254_v26  ;;  %293 = vst.msk [vmem:[#allocation2] sm:$0xff] %vm63_vm2, %v254_v26  ;;  %268 = vperm.xlu1 %447, %v254_v26  }
 0x1a7   :  { %v253_v29 = vpop.xlane.xlu0 %252 }
 0x1a8   :  { %v255_v30 = vmax.f32 %v246_v27, %v253_v29  ;;  %v260_v42 = vmul.f32 1.442695, %v258_v28 }
 0x1aa   :  { %v259_v31 = vsub.f32 %v246_v27, %v255_v30  ;;  %294 = vst.msk [vmem:[#allocation2 + $0x8] sm:$0xff] %vm63_vm2, %v255_v30  ;;  %273 = vperm.xlu1 %447, %v255_v30  }
 0x1ac   :  { %v262_v43 = vmul.f32 1.442695, %v259_v31 }
 0x1ad   :  { %v298_v58 = vld [vmem:[#allocation2] sm:$0xff] }
 0x1b1   :  { %v299_v62 = vld [vmem:[#allocation2 + $0x8] sm:$0xff] }
 0x225   :  { %v269_v32 = vpop.permute.xlu1 %268 }
 0x226   :  { %v276_v33 = vsub.f32 %v243_v19, %v269_v32 }
 0x228   :  { %v278_v34 = vmul.f32 1.442695, %v276_v33 }
 0x229   :  { %v274_v35 = vpop.permute.xlu1 %273 }
 0x22a   :  { %449 = vpow2.f32 %v278_v34  ;;  %v277_v36 = vsub.f32 %v244_v20, %v274_v35 }
 0x22c   :  { %v280_v37 = vmul.f32 1.442695, %v277_v36 }
 0x22e   :  { %451 = vpow2.f32 %v280_v37 }
 0x22f   :  { %453 = vpow2.f32 %v260_v42 }
 0x230   :  { %455 = vpow2.f32 %v262_v43 }
 0x234   :  { %v450_v38 = vpop.eup %449 }
 0x235   :  { %v282_v39 = vsel %vm247_vm4, %v450_v38, 0.0 }
 0x236   :  { %283 = vadd.xlane.f32.xlu0 %v282_v39 }
 0x238   :  { %v452_v40 = vpop.eup %451 }
 0x239   :  { %v285_v41 = vsel %vm247_vm4, %v452_v40, 0.0  ;;  %v454_v44 = vpop.eup %453 }
 0x23a   :  { %286 = vadd.xlane.f32.xlu1 %v285_v41  ;;  %v264_v46 = vmul.f32 %v454_v44, %v256_v45  ;;  %v456_v47 = vpop.eup %455 }
 0x23b   :  { %v265_v51 = vmul.f32 %v456_v47, %v257_v49 }
 0x2c3   :  { %v284_v48 = vpop.xlane.xlu0 %283 }
 0x2c4   :  { %v288_v50 = vadd.f32 %v284_v48, %v264_v46 }
 0x2c6   :  { %291 = vst.msk [vmem:[#allocation3] sm:$0xff] %vm63_vm2, %v288_v50 }
 0x2c7   :  { %v287_v52 = vpop.xlane.xlu1 %286 }
 0x2c8   :  { %v289_v53 = vadd.f32 %v287_v52, %v265_v51 }
 0x2ca   :  { %292 = vst.msk [vmem:[#allocation3 + $0x8] sm:$0xff] %vm63_vm2, %v289_v53 }
 0x2cd   :  { %v300_v54 = vld [vmem:[#allocation3] sm:$0xff] }
 0x2ce   :  { %457 = vlog2.f32 %v300_v54 }
 0x2d1   :  { %v301_v55 = vld [vmem:[#allocation3 + $0x8] sm:$0xff] }
 0x2d2   :  { %459 = vlog2.f32 %v301_v55 }
 0x2d8   :  { %v458_v56 = vpop.eup %457 }
 0x2d9   :  { %v303_v57 = vmul.f32 0.6931472, %v458_v56 }
 0x2db   :  { %v306_v59 = vadd.f32 %v303_v57, %v298_v58 }
 0x2dc   :  { %v460_v60 = vpop.eup %459 }
 0x2dd   :  { %308 = vxpose.xlu0.b32.start.end [1/1] (short) (narrow) %v306_v59, 8  ;;  %v305_v61 = vmul.f32 0.6931472, %v460_v60 }
 0x2df   :  { %v307_v63 = vadd.f32 %v305_v61, %v299_v62 }
 0x2e1   :  { %340 = vxpose.xlu1.b32.start.end [1/1] (short) (narrow) %v307_v63, 8 }
 0x306   :  { %448 = vset.pattern.permute.xlu0 %v571_v23 }
 0x35d   :  { %v324_v3 = vpop.trf.xlu0 }
 0x35e   :  { %v376_v4 = vsub.f32 %v324_v3, %v374_v1 }
 0x360   :  { %v380_v6 = vand.u32 2147483647, %v376_v4  ;;  %v378_v19 = vmax.f32 %v376_v4, 0.0 }
 0x361   :  { %v356_v7 = vpop.trf.xlu1 }
 0x362   :  { %v382_v8 = vsub.f32 0.0, %v380_v6  ;;  %v377_v9 = vsub.f32 %v356_v7, %v375_v5 }
 0x364   :  { %v384_v10 = vmul.f32 1.442695, %v382_v8  ;;  %v381_v11 = vand.u32 2147483647, %v377_v9  ;;  %v379_v23 = vmax.f32 %v377_v9, 0.0 }
 0x366   :  { %461 = vpow2.f32 %v384_v10  ;;  %v383_v12 = vsub.f32 0.0, %v381_v11 }
 0x368   :  { %v386_v13 = vmul.f32 1.442695, %v383_v12 }
 0x36a   :  { %463 = vpow2.f32 %v386_v13 }
 0x370   :  { %v462_v14 = vpop.eup %461 }
 0x371   :  { %v388_v15 = vadd.f32 1.0, %v462_v14 }
 0x373   :  { %465 = vlog2.f32 %v388_v15 }
 0x374   :  { %v464_v16 = vpop.eup %463 }
 0x375   :  { %v389_v17 = vadd.f32 1.0, %v464_v16 }
 0x377   :  { %467 = vlog2.f32 %v389_v17 }
 0x37d   :  { %v466_v18 = vpop.eup %465 }
 0x37e   :  { %v391_v20 = vmul.f32 0.6931472, %v466_v18 }
 0x380   :  { %v394_v21 = vadd.f32 %v391_v20, %v378_v19 }
 0x381   :  { %v468_v22 = vpop.eup %467 }
 0x382   :  { %v393_v24 = vmul.f32 0.6931472, %v468_v22  ;;  %397 = vst.msk [vmem:[#allocation10] sm:$0x1] %vm396_vm5, %v394_v21 }
 0x384   :  { %v395_v25 = vadd.f32 %v393_v24, %v379_v23 }
 0x386   :  { %398 = vst.msk [vmem:[#allocation10 + $0x1] sm:$0x1] %vm396_vm5, %v395_v25 }
 0x387   :  { %546 = shalt.err (!%p543_p0)
}
 0x388   :  { %s547_s6 = scalar_lea.hbm %s686_s4, 32 }
 0x389   :  { %p548_p1 = scmp.ne.s32.totalorder %s686_s4, %s547_s6  ;;  %p551_p2 = scmp.lt.u32.totalorder %s547_s6, %s686_s4 }
 0x38b   :  { %p553_p3 = pnand %p551_p2, %p548_p1 }
 0x38d   :  { %556 = shalt.err (!%p553_p3)
}
 0x38e   :  { %s573_s11 = smov 16   ;;  %s574_s12 = smov 1  }
 0x38f   :  { %410 = dma.vmem_to_hbm [thread:$0]  %s405_s28, 32, %s686_s4, [#allocation6], %s573_s11, %s573_s11, %s574_s12  }
 0x390   :  { %561 = dma.done.wait [#allocation6], 32  }
 0x391   :  { %562 = vsyncadd [#allocation6], 4294967264 }
 0x392   :  { %414 = vsyncpa [#allocation5], 1 }
 0x393   :  { %415 = vsyncpa [#allocation8], 1 }
 0x394   :  { %416 = vsyncpa [#allocation6], 1 }

</bundles_post_ra>
